<compile_context>
chip_gen: v6e
topology: v6e:2x2x1
jax: 0.10.0
libtpu: 0.0.40
codegen_flags: <defaults>
</compile_context>

<pallas_src>
import math

import jax
import jax.numpy as jnp
from jax.experimental import pallas as pl
from jax.experimental.pallas import tpu as pltpu


# ------------------------- Tiled linear (y = x W^T + b) ---------------------- #

def _linear_bias_kernel(x_ref, w_ref, b_ref, o_ref, acc_ref):
    # x: (tm, tk), w: (tn, tk) in PyTorch (out, in) layout, b: (1, tn).
    @pl.when(pl.program_id(2) == 0)
    def _():
        acc_ref[...] = jnp.zeros_like(acc_ref)

    # Contract dim 1 of both operands: the MXU consumes (O, K) directly,
    # no per-tile transpose.
    acc_ref[...] += jax.lax.dot_general(
        x_ref[...], w_ref[...],
        dimension_numbers=(((1,), (1,)), ((), ())),
        preferred_element_type=jnp.float32)

    @pl.when(pl.program_id(2) == pl.num_programs(2) - 1)
    def _():
        o_ref[...] = (acc_ref[...] + b_ref[...].astype(jnp.float32)).astype(o_ref.dtype)


def _linear_nobias_kernel(x_ref, w_ref, o_ref, acc_ref):
    @pl.when(pl.program_id(2) == 0)
    def _():
        acc_ref[...] = jnp.zeros_like(acc_ref)

    acc_ref[...] += jax.lax.dot_general(
        x_ref[...], w_ref[...],
        dimension_numbers=(((1,), (1,)), ((), ())),
        preferred_element_type=jnp.float32)

    @pl.when(pl.program_id(2) == pl.num_programs(2) - 1)
    def _():
        o_ref[...] = acc_ref[...].astype(o_ref.dtype)


def _pick_parallel_tile(dim, cap, align):
    # Parallel axes use a cdiv grid, so the tile need not divide `dim`
    # (out-of-bounds rows/cols of the ragged last block are dropped on write).
    return dim if dim <= cap else (cap // align) * align


def _pick_reduction_tile(dim, cap, align):
    # The reduction (K) tile must divide K exactly (OOB reads would pollute the
    # accumulator); fall back to the full K if no aligned divisor exists.
    if dim <= cap:
        return dim
    t = (cap // align) * align
    while t >= align:
        if dim % t == 0:
            return t
        t -= align
    return dim


def linear(x, w, b=None):
    """x: (M, K), w: (O, K) [PyTorch layout], b: (O,) or None -> (M, O)."""
    M, K = x.shape
    O, K2 = w.shape
    assert K == K2

    # Tile caps raised per review (tm 512 / tn 512 / tk 512).  f32 footprint at
    # the caps: 2*(1+1) MiB inputs (double-buffered) + 2 MiB out + 1 MiB acc
    # ~= 7 MiB, inside even v5e's 16 MiB default scoped VMEM.
    # TODO(synk): tn could go to 1024 on v5e/v6e (128 MiB VMEM) with an
    # explicit vmem_limit_bytes; kept at 512 so the same tiling is safe on v7x.
    tm = _pick_parallel_tile(M, 512, 8)
    tn = _pick_parallel_tile(O, 512, 128)
    tk = _pick_reduction_tile(K, 512, 128)
    grid = (pl.cdiv(M, tm), pl.cdiv(O, tn), K // tk)

    x_spec = pl.BlockSpec((tm, tk), lambda i, j, k: (i, k))
    w_spec = pl.BlockSpec((tn, tk), lambda i, j, k: (j, k))
    out_spec = pl.BlockSpec((tm, tn), lambda i, j, k: (i, j))
    common = dict(
        out_shape=jax.ShapeDtypeStruct((M, O), x.dtype),
        grid=grid,
        out_specs=out_spec,
        scratch_shapes=[pltpu.VMEM((tm, tn), jnp.float32)],
        compiler_params=pltpu.CompilerParams(
            dimension_semantics=("parallel", "parallel", "arbitrary")),
    )

    if b is None:
        # Specialized: no pointless zero-bias DMA / VPU add in the epilogue.
        return pl.pallas_call(
            _linear_nobias_kernel, in_specs=[x_spec, w_spec], **common)(x, w)

    b2 = b.reshape(1, O)
    b_spec = pl.BlockSpec((1, tn), lambda i, j, k: (0, j))
    return pl.pallas_call(
        _linear_bias_kernel, in_specs=[x_spec, w_spec, b_spec], **common)(x, w, b2)


# --------------------------- Attention core kernel --------------------------- #

def _sdpa_kernel(q_ref, k_ref, v_ref, o_ref):
    # Refs (one (batch-block, query-block) pair per grid step):
    #   q: (lq, bn, H, Dh), k/v: (S, bn, H, Dh), o: (lq, bn, E = H*Dh).
    # The 1/sqrt(Dh) softmax scale is folded into the q projection weights.
    lq, bn, num_head, head_dim = q_ref.shape

    for b in range(bn):  # bn is a small batch block; static loop, one store per iter
        # One head-major relayout per operand (instead of 3*H per-head sublane
        # slices) so both matmuls issue as head-batched, leading-batch-dim dots.
        qb = pltpu.einshape("lhd->hld", q_ref[:, b, :, :])     # (H, lq, Dh)
        kb = pltpu.einshape("shd->hsd", k_ref[:, b, :, :])     # (H, S,  Dh)
        vb = pltpu.einshape("shd->hsd", v_ref[:, b, :, :])     # (H, S,  Dh)

        s = jnp.einsum("hld,hsd->hls", qb, kb,
                       preferred_element_type=jnp.float32)     # (H, lq, S)
        m = jnp.max(s, axis=-1, keepdims=True)
        p = jnp.exp(s - m)                                     # unnormalized probs
        denom = jnp.sum(p, axis=-1, keepdims=True)
        o = jnp.einsum("hls,hsd->hld", p.astype(vb.dtype), vb,
                       preferred_element_type=jnp.float32)     # (H, lq, Dh)
        o = (o * pl.reciprocal(denom, approx=False)).astype(o_ref.dtype)

        # Lane-dense output block: o[h] slices the leading dim (no relayout);
        # the HBM writeback is a single unmasked (lq, bn, E) DMA.
        for h in range(num_head):
            o_ref[:, b, h * head_dim:(h + 1) * head_dim] = o[h]

    # TODO(synk): for sequences far beyond ViT scale, convert to the
    # flash/online-softmax form with a KV ("arbitrary") grid axis instead of
    # materializing the full (H, lq, S) score matrix.


def _pick_sdpa_blocks(L, S, N, H, Dh, itemsize):
    """Choose (lq, bn) for the SDPA grid and a scoped-VMEM limit.

    lq blocks the query length (bounds the (H, lq, S) temporaries, second
    parallel axis for v7x's two TensorCores); bn blocks the batch (amortizes
    the ~0.35us per-grid-step overhead).  bn must equal N or be a multiple of
    8 because it is the second-minor dim of the lane-dense (lq, bn, E) output
    block.
    """
    lane = 128
    E = H * Dh
    lq = min(L, 512)
    dh_pad = max(Dh, lane)        # lane padding of the Dh-minor q/k/v blocks

    def est(bn):
        blocks = 2 * itemsize * bn * (lq + 2 * S) * H * dh_pad      # q/k/v, double-buffered
        blocks += 2 * itemsize * lq * bn * max(E, lane)             # out, double-buffered
        temps = itemsize * (lq + 2 * S) * H * dh_pad                # head-major copies
        temps += 4 * H * (2 * lq * max(S, lane) + lq * dh_pad)      # scores/probs/PV (f32)
        return blocks + temps

    budget = 24 * 1024 * 1024     # headroom under the 32 MiB scoped limit we request
    if N < 8 or est(N) <= budget:
        bn = N
    else:
        bn = 8
        for cand in (32, 24, 16, 8):
            if cand <= N and est(cand) <= budget:
                bn = cand
                break

    # Raise the scoped limit explicitly (v5e defaults to 16 MiB); stay well
    # clear of v7x's 64 MiB physical VMEM for typical shapes.
    vmem_limit = int(min(max(32 * 1024 * 1024, est(bn) + (8 << 20)),
                         100 * 1024 * 1024))
    return lq, bn, vmem_limit


# ------------------------------ Parameter prep ------------------------------- #

def prepare_params(params, num_head):
    """One-time parameter preparation (keep off the per-forward critical path).

    * Folds the 1/sqrt(Dh) softmax scale into the q projection (wq, bq).
    * Builds the fused (3E, E) QKV weight / (3E,) bias for the self-attention
      fast path.  k/v biases ("bk"/"bv") and an out_proj bias ("bo") are only
      used if present -- the spec module constructs k_proj/v_proj with
      bias=add_bias_kv (default False) and out_proj with bias=False.
    """
    E = params["wq"].shape[0]
    Dh = E // num_head
    scale = 1.0 / math.sqrt(Dh)
    dtype = params["wq"].dtype

    wq_s = params["wq"] * scale
    bq_s = params["bq"] * scale
    bk = params.get("bk")
    bv = params.get("bv")
    zeros = jnp.zeros((E,), dtype)

    return {
        "wq_scaled": wq_s,
        "bq_scaled": bq_s,
        "wk": params["wk"],
        "bk": bk,
        "wv": params["wv"],
        "bv": bv,
        "wo": params["wo"],
        "bo": params.get("bo"),
        "w_qkv": jnp.concatenate([wq_s, params["wk"], params["wv"]], axis=0),
        "b_qkv": jnp.concatenate([bq_s,
                                  bk if bk is not None else zeros,
                                  bv if bv is not None else zeros]),
    }


# ------------------------------ Forward wrapper ------------------------------ #

def multi_head_attention(query, key, value, params, num_head,
                         is_self_attention=None):
    """
    query: (L, N, E), key: (S, N, E), value: (S, N, E)   (batch_first=False)
    params: output of prepare_params().
    Returns (attn_output of shape (L, N, E), None), matching the module.
    """
    # TODO(synk): attn_mask / key_padding_mask / training-time dropout are not
    # implemented (module defaults: None / eval); attention weights are never
    # returned, exactly like the reference forward.
    L, N, E = query.shape
    S = key.shape[0]
    Dh = E // num_head
    assert Dh * num_head == E

    if is_self_attention is None:
        # Object-identity check is only perf routing (fused vs. 3-projection
        # path); pass is_self_attention=True explicitly if the arrays were
        # copied/transformed but are still the same tensor.
        is_self_attention = (query is key) and (key is value)

    lq, bn, vmem_limit = _pick_sdpa_blocks(L, S, N, num_head, Dh,
                                           query.dtype.itemsize)
    grid = (pl.cdiv(N, bn), pl.cdiv(L, lq))     # (batch blocks, query blocks)
    out_spec = pl.BlockSpec((lq, bn, E), lambda n, l: (l, n, 0))
    cparams = pltpu.CompilerParams(
        dimension_semantics=("parallel", "parallel"),
        vmem_limit_bytes=vmem_limit)

    if is_self_attention:
        # Self-attention (the ViT case): one fused (3E, E) projection -- a single
        # MXU pass / single HBM read of the activations instead of three.
        qkv = linear(query.reshape(L * N, E), params["w_qkv"], params["b_qkv"])
        # Free reshape; the attention kernel extracts q/k/v from the fused tensor
        # via BlockSpec index_maps (no HBM slice round trips).
        qkv5 = qkv.reshape(L, N, 3, num_head, Dh)
        in_specs = [
            pl.BlockSpec((lq, bn, None, num_head, Dh), lambda n, l: (l, n, 0, 0, 0)),
            pl.BlockSpec((S, bn, None, num_head, Dh), lambda n, l: (0, n, 1, 0, 0)),
            pl.BlockSpec((S, bn, None, num_head, Dh), lambda n, l: (0, n, 2, 0, 0)),
        ]
        operands = (qkv5, qkv5, qkv5)
        dtype = qkv.dtype
    else:
        # General (cross-attention) path: three tiled projections.
        q = linear(query.reshape(L * N, E), params["wq_scaled"], params["bq_scaled"])
        k = linear(key.reshape(S * N, E), params["wk"], params["bk"])
        v = linear(value.reshape(S * N, E), params["wv"], params["bv"])
        q4 = q.reshape(L, N, num_head, Dh)        # free reshapes, no transposes
        k4 = k.reshape(S, N, num_head, Dh)
        v4 = v.reshape(S, N, num_head, Dh)
        in_specs = [
            pl.BlockSpec((lq, bn, num_head, Dh), lambda n, l: (l, n, 0, 0)),
            pl.BlockSpec((S, bn, num_head, Dh), lambda n, l: (0, n, 0, 0)),
            pl.BlockSpec((S, bn, num_head, Dh), lambda n, l: (0, n, 0, 0)),
        ]
        operands = (q4, k4, v4)
        dtype = q.dtype

    attn = pl.pallas_call(
        _sdpa_kernel,
        out_shape=jax.ShapeDtypeStruct((L, N, E), dtype),
        grid=grid,
        in_specs=in_specs,
        out_specs=out_spec,
        compiler_params=cparams,
    )(*operands)

    # attn is already (L, N, E) and lane-dense, so the reshape to the
    # out-projection operand (L*N, E) is free (no HBM transpose).
    out = linear(attn.reshape(L * N, E), params["wo"], params["bo"])
    return out.reshape(L, N, E), None


# Pure-JAX reference (silent sanity check), using the RAW (unprepared) params.
def _reference(query, key, value, params, num_head):
    L, N, E = query.shape
    S = key.shape[0]
    Dh = E // num_head
    q = query.reshape(L * N, E) @ params["wq"].T + params["bq"]
    k = key.reshape(S * N, E) @ params["wk"].T
    v = value.reshape(S * N, E) @ params["wv"].T
    q = q.reshape(L, N * num_head, Dh).transpose(1, 0, 2)
    k = k.reshape(S, N * num_head, Dh).transpose(1, 0, 2)
    v = v.reshape(S, N * num_head, Dh).transpose(1, 0, 2)
    s = jnp.einsum("bld,bsd->bls", q, k) / math.sqrt(Dh)
    p = jax.nn.softmax(s, axis=-1)
    o = jnp.einsum("bls,bsd->bld", p, v)
    o = o.reshape(N, num_head, L, Dh).transpose(2, 0, 1, 3).reshape(L * N, E)
    o = o @ params["wo"].T
    return o.reshape(L, N, E)


if __name__ == "__main__":
    # Small shapes consistent with the module: seq=8, batch=2, embed=32, heads=4.
    L, S, N, E, H = 8, 8, 2, 32, 4
    root = jax.random.PRNGKey(0)
    k1, k2, k3, k4, k5, k6, k7, k8 = jax.random.split(root, 8)

    query = jax.random.normal(k1, (L, N, E), jnp.float32)
    key_t = jax.random.normal(k2, (S, N, E), jnp.float32)
    value = jax.random.normal(k3, (S, N, E), jnp.float32)

    # Deterministic synthetic parameters (nn.Linear shapes: (out_features, in_features)).
    raw_params = {
        "wq": 0.05 * jax.random.normal(k4, (E, E), jnp.float32),
        "bq": 0.05 * jax.random.normal(k5, (E,), jnp.float32),
        "wk": 0.05 * jax.random.normal(k6, (E, E), jnp.float32),  # add_bias_kv=False -> no bias
        "wv": 0.05 * jax.random.normal(k7, (E, E), jnp.float32),  # add_bias_kv=False -> no bias
        "wo": 0.05 * jax.random.normal(k8, (E, E), jnp.float32),  # out_proj bias=False
    }
    params = prepare_params(raw_params, H)   # one-time prep (fused QKV, scale fold)

    # Self-attention (ViT usage): exercises the fused-QKV fast path.
    out_sa, w_sa = multi_head_attention(query, query, query, params, H)
    # Cross-attention: exercises the general three-projection path.
    out_ca, w_ca = multi_head_attention(query, key_t, value, params, H)
    out_sa, out_ca = jax.block_until_ready((out_sa, out_ca))

    assert out_sa.shape == (L, N, E) and out_ca.shape == (L, N, E)
    assert w_sa is None and w_ca is None  # module always returns None for weights

    ref_sa = _reference(query, query, query, raw_params, H)
    ref_ca = _reference(query, key_t, value, raw_params, H)
    assert jnp.allclose(out_sa, ref_sa, atol=1e-3, rtol=1e-3)
    assert jnp.allclose(out_ca, ref_ca, atol=1e-3, rtol=1e-3)

    print("KERNEL_OK")
</pallas_src>

<mosaic_0001>
module attributes {stable_mosaic.version = 11 : i64} {
  func.func @_linear_bias_kernel(%arg0: i32, %arg1: i32, %arg2: i32, %arg3: memref<16x32xf32, #tpu.memory_space<vmem>>, %arg4: memref<96x32xf32, #tpu.memory_space<vmem>>, %arg5: memref<1x96xf32, #tpu.memory_space<vmem>>, %arg6: memref<16x96xf32, #tpu.memory_space<vmem>>, %arg7: memref<16x96xf32, #tpu.memory_space<vmem>>) attributes {dimension_semantics = [#tpu.dimension_semantics<parallel>, #tpu.dimension_semantics<parallel>, #tpu.dimension_semantics<arbitrary>], iteration_bounds = array<i64: 1, 1, 1>, scalar_prefetch = 0 : i64, scratch_operands = 1 : i64, tpu.core_type = #tpu.core_type<tc>, window_params = [{transform_indices = @transform_0, window_bounds = array<i64: 16, 32>}, {transform_indices = @transform_1, window_bounds = array<i64: 96, 32>}, {transform_indices = @transform_2, window_bounds = array<i64: 1, 96>}, {transform_indices = @transform_3, window_bounds = array<i64: 16, 96>}]} {
    %c0_i32 = arith.constant 0 : i32
    %0 = arith.cmpi eq, %arg2, %c0_i32 : i32
    %1 = arith.extui %0 : i1 to i32
    %c0_i32_0 = arith.constant 0 : i32
    %2 = arith.cmpi ne, %1, %c0_i32_0 : i32
    scf.if %2 {
      %cst_10 = arith.constant 0.000000e+00 : f32
      %12 = vector.broadcast %cst_10 : f32 to vector<16x96xf32>
      %c0_11 = arith.constant 0 : index
      %c0_12 = arith.constant 0 : index
      %13 = vector.load %arg7[%c0_11, %c0_12] : memref<16x96xf32, #tpu.memory_space<vmem>>, vector<16x96xf32>
      tpu.vector_store %arg7[%c0_11, %c0_12], %12 {strides = array<i32>} : memref<16x96xf32, #tpu.memory_space<vmem>>, vector<16x96xf32>,
    } else {
    }
    %c0 = arith.constant 0 : index
    %c0_1 = arith.constant 0 : index
    %3 = vector.load %arg7[%c0, %c0_1] : memref<16x96xf32, #tpu.memory_space<vmem>>, vector<16x96xf32>
    %c0_2 = arith.constant 0 : index
    %c0_3 = arith.constant 0 : index
    %4 = vector.load %arg3[%c0_2, %c0_3] : memref<16x32xf32, #tpu.memory_space<vmem>>, vector<16x32xf32>
    %c0_4 = arith.constant 0 : index
    %c0_5 = arith.constant 0 : index
    %5 = vector.load %arg4[%c0_4, %c0_5] : memref<96x32xf32, #tpu.memory_space<vmem>>, vector<96x32xf32>
    %cst = arith.constant dense<0.000000e+00> : vector<16x96xf32>
    %6 = tpu.matmul %4, %5, %cst {dimension_numbers = #tpu.dot_dimension_numbers<[1], [1], [0], [0], [0, 0, 1, 0], [], []>} : vector<16x32xf32>, vector<96x32xf32>, vector<16x96xf32> -> vector<16x96xf32>
    %7 = arith.addf %3, %6 : vector<16x96xf32>
    %c0_6 = arith.constant 0 : index
    %c0_7 = arith.constant 0 : index
    %8 = vector.load %arg7[%c0_6, %c0_7] : memref<16x96xf32, #tpu.memory_space<vmem>>, vector<16x96xf32>
    tpu.vector_store %arg7[%c0_6, %c0_7], %7 {strides = array<i32>} : memref<16x96xf32, #tpu.memory_space<vmem>>, vector<16x96xf32>,
    %c0_i32_8 = arith.constant 0 : i32
    %9 = arith.cmpi eq, %arg2, %c0_i32_8 : i32
    %10 = arith.extui %9 : i1 to i32
    %c0_i32_9 = arith.constant 0 : i32
    %11 = arith.cmpi ne, %10, %c0_i32_9 : i32
    scf.if %11 {
      %c0_10 = arith.constant 0 : index
      %c0_11 = arith.constant 0 : index
      %12 = vector.load %arg7[%c0_10, %c0_11] : memref<16x96xf32, #tpu.memory_space<vmem>>, vector<16x96xf32>
      %c0_12 = arith.constant 0 : index
      %c0_13 = arith.constant 0 : index
      %13 = vector.load %arg5[%c0_12, %c0_13] : memref<1x96xf32, #tpu.memory_space<vmem>>, vector<1x96xf32>
      %14 = vector.broadcast %13 : vector<1x96xf32> to vector<16x96xf32>
      %15 = arith.addf %12, %14 : vector<16x96xf32>
      %c0_14 = arith.constant 0 : index
      %c0_15 = arith.constant 0 : index
      %16 = vector.load %arg6[%c0_14, %c0_15] : memref<16x96xf32, #tpu.memory_space<vmem>>, vector<16x96xf32>
      tpu.vector_store %arg6[%c0_14, %c0_15], %15 {strides = array<i32>} : memref<16x96xf32, #tpu.memory_space<vmem>>, vector<16x96xf32>,
    } else {
    }
    return
  }
  func.func @transform_0(%arg0: i32, %arg1: i32, %arg2: i32) -> (i32, i32) {
    %c0_i32 = arith.constant 0 : i32
    return %arg0, %arg2 : i32, i32
  }
  func.func @transform_1(%arg0: i32, %arg1: i32, %arg2: i32) -> (i32, i32) {
    %c0_i32 = arith.constant 0 : i32
    return %arg1, %arg2 : i32, i32
  }
  func.func @transform_2(%arg0: i32, %arg1: i32, %arg2: i32) -> (i32, i32) {
    %c0_i32 = arith.constant 0 : i32
    %c0_i32_0 = arith.constant 0 : i32
    return %c0_i32, %arg1 : i32, i32
  }
  func.func @transform_3(%arg0: i32, %arg1: i32, %arg2: i32) -> (i32, i32) {
    %c0_i32 = arith.constant 0 : i32
    return %arg0, %arg1 : i32, i32
  }
}

</mosaic_0001>

<bundles_post_ra>
// kernel: tpu_custom_call.1
= control target key start
LH: loop header
LB: loop body
LE: loop exit
PB: predicated region body
PF: predicated region fallthrough
CT: control target
= control target key end

     0   :  { %vm38_vm0 = vcmask 261120   ;;  %vm19_vm1 = vcmask 785408   ;;  %v275_v2 = vmov 0.0   ;;  %s379_s0 = inlined_call_operand.vmem [shape: f32[16,32], index: 0, kind: input, shape index: {}]   ;;  %s380_s1 = inlined_call_operand.vmem [shape: f32[96,32], index: 1, kind: input, shape index: {}]   ;;  %s381_s2 = inlined_call_operand.vmem [shape: f32[1,96], index: 2, kind: input, shape index: {}]   ;;  %s382_s3 = inlined_call_operand.hbm [shape: f32[16,96], index: 3, kind: output, shape index: {}]  }
   0x1   :  { %v37_v0 = vld [vmem:[%s380_s1 + $0x58] sm:$0xff]  ;;  %v36_v1 = vld [vmem:[%s380_s1 + $0x50] sm:$0xff]  ;;  %21 = vst.msk [vmem:[#allocation2 + $0x8] sm:$0xff] %vm19_vm1, %v275_v2  ;;  %20 = vst.msk [vmem:[#allocation2] sm:$0xff] %vm19_vm1, %v275_v2 }
   0x2   :  { %222 = vmatprep.subr.msk.mxu0 %vm38_vm0, %v37_v0  ;;  %v35_v3 = vld [vmem:[%s380_s1 + $0x48] sm:$0xff]  ;;  %v24_v4 = vld [vmem:[%s379_s0] sm:$0xff] }
   0x3   :  { %223 = vmatpush3.xpose.msk.msra.mxu0 %vm38_vm0, %v37_v0 }
   0x4   :  { %224 = vmatprep.subr.msk.mxu0 %vm38_vm0, %v36_v1 }
   0x5   :  { %8 = vsyncpa [#allocation4], 0  ;;  %246 = vmatprep.mubr.msk.f32.mxu0 %vm38_vm0, %v24_v4  ;;  %v34_v5 = vld [vmem:[%s380_s1 + $0x40] sm:$0xff]  ;;  %v33_v6 = vld [vmem:[%s380_s1 + $0x38] sm:$0xff]  ;;  %s276_s14 = smov [#allocation3]  }
   0x6   :  { %v32_v7 = vld [vmem:[%s380_s1 + $0x30] sm:$0xff]  ;;  %v31_v8 = vld [vmem:[%s380_s1 + $0x28] sm:$0xff]  ;;  %v30_v9 = vld [vmem:[%s380_s1 + $0x20] sm:$0xff]  ;;  %s182_s15 = sshll.u32 %s276_s14, 4  ;;  %s183_s15 = int_to_ptr.vmem [resolvable:$true] %s182_s15 }
   0x7   :  { %225 = vmatpush3.xpose.msk.msra.mxu0 %vm38_vm0, %v36_v1  ;;  %v29_v10 = vld [vmem:[%s380_s1 + $0x18] sm:$0xff]  ;;  %v28_v11 = vld [vmem:[%s380_s1 + $0x10] sm:$0xff]  ;;  %v27_v12 = vld [vmem:[%s380_s1 + $0x8] sm:$0xff]  ;;  %p258_p1 = scmp.lt.s32.totalorder %s183_s15, %s183_s15 }
   0x8   :  { %226 = vmatprep.subr.msk.mxu0 %vm38_vm0, %v35_v3  ;;  %v26_v13 = vld [vmem:[%s380_s1] sm:$0xff]  ;;  %v25_v14 = vld [vmem:[%s379_s0 + $0x8] sm:$0xff]  ;;  %s253_s0 = scalar_lea.vmem %s183_s15, 256 }
   0x9   :  { %v23_v15 = vld [vmem:[#allocation2 + $0x8] sm:$0xff]  ;;  %v22_v17 = vld [vmem:[#allocation2] sm:$0xff]  ;;  %p254_p0 = scmp.ne.s32.totalorder %s183_s15, %s253_s0  ;;  %p259_p2 = scmp.lt.s32.totalorder %s253_s0, %s253_s0 }
   0xa   :  { %v207_v21 = vld [vmem:[%s381_s2] ss:$0 sm:$0xff] }
   0xb   :  { %227 = vmatpush3.xpose.msk.msra.mxu0 %vm38_vm0, %v35_v3  ;;  %p260_p3 = por %p259_p2, %p258_p1 }
   0xc   :  { %228 = vmatprep.subr.msk.mxu0 %vm38_vm0, %v34_v5 }
   0xd   :  { %p261_p4 = pnand %p260_p3, %p254_p0 }
   0xf   :  { %229 = vmatpush3.xpose.msk.msra.mxu0 %vm38_vm0, %v34_v5 }
  0x10   :  { %230 = vmatprep.subr.msk.mxu0 %vm38_vm0, %v33_v6 }
  0x13   :  { %231 = vmatpush3.xpose.msk.msra.mxu0 %vm38_vm0, %v33_v6 }
  0x14   :  { %232 = vmatprep.subr.msk.mxu0 %vm38_vm0, %v32_v7 }
  0x17   :  { %233 = vmatpush3.xpose.msk.msra.mxu0 %vm38_vm0, %v32_v7 }
  0x18   :  { %234 = vmatprep.subr.msk.mxu0 %vm38_vm0, %v31_v8 }
  0x1b   :  { %235 = vmatpush3.xpose.msk.msra.mxu0 %vm38_vm0, %v31_v8 }
  0x1c   :  { %236 = vmatprep.subr.msk.mxu0 %vm38_vm0, %v30_v9 }
  0x1f   :  { %237 = vmatpush3.xpose.msk.msra.mxu0 %vm38_vm0, %v30_v9 }
  0x20   :  { %238 = vmatprep.subr.msk.mxu0 %vm38_vm0, %v29_v10 }
  0x23   :  { %239 = vmatpush3.xpose.msk.msra.mxu0 %vm38_vm0, %v29_v10 }
  0x24   :  { %240 = vmatprep.subr.msk.mxu0 %vm38_vm0, %v28_v11 }
  0x27   :  { %241 = vmatpush3.xpose.msk.msra.mxu0 %vm38_vm0, %v28_v11 }
  0x28   :  { %242 = vmatprep.subr.msk.mxu0 %vm38_vm0, %v27_v12 }
  0x2b   :  { %243 = vmatpush3.xpose.msk.msra.mxu0 %vm38_vm0, %v27_v12 }
  0x2c   :  { %244 = vmatprep.subr.msk.mxu0 %vm38_vm0, %v26_v13 }
  0x2f   :  { %245 = vmatpush3.xpose.msk.msra.mxu0 %vm38_vm0, %v26_v13 }
  0x32   :  { %247 = vmatmul.mubr.msk.f32.vlgmr.msra.gmra.mxu0 %vm38_vm0, %v25_v14 }
  0xf2   :  { %v248_v16 = vpop.f32.mrf.mxu0 }
  0xf3   :  { %v157_v18 = vadd.f32 %v248_v16, %v23_v15 }
  0xf4   :  { %v147_v19 = vpop.f32.mrf.mxu0 }
  0xf5   :  { %160 = vst.msk [vmem:[#allocation2 + $0x8] sm:$0xff] %vm19_vm1, %v157_v18  ;;  %v156_v20 = vadd.f32 %v147_v19, %v22_v17 }
  0xf7   :  { %159 = vst.msk [vmem:[#allocation2] sm:$0xff] %vm19_vm1, %v156_v20 }
  0xfc   :  { %v165_v22 = vld [vmem:[#allocation2 + $0x8] sm:$0xff] }
  0xfd   :  { %v174_v23 = vadd.f32 %v207_v21, %v165_v22 }
  0xfe   :  { %v164_v24 = vld [vmem:[#allocation2] sm:$0xff] }
  0xff   :  { %v173_v25 = vadd.f32 %v207_v21, %v164_v24  ;;  %176 = vst.msk [vmem:[#allocation3 + $0x8] sm:$0xff] %vm19_vm1, %v174_v23 }
 0x101   :  { %175 = vst.msk [vmem:[#allocation3] sm:$0xff] %vm19_vm1, %v173_v25 }
 0x102   :  { %264 = shalt.err (!%p261_p4)
}
 0x103   :  { %s277_s16 = smov 128   ;;  %s278_s2 = smov 8  }
 0x104   :  { %188 = dma.vmem_to_hbm [thread:$0]  %s183_s15, 256, %s382_s3, [#allocation4], %s277_s16, %s277_s16, %s278_s2  }
 0x105   :  { %273 = dma.done.wait [#allocation4], 256  }
 0x106   :  { %274 = vsyncadd [#allocation4], 4294967040 }
 0x107   :  { %192 = vsyncpa [#allocation4], 1 }

</bundles_post_ra>
